<compile_context>
chip_gen: v7x
topology: tpu7x:2x2x1
jax: 0.10.0
libtpu: 0.0.40
codegen_flags: <defaults>
</compile_context>

<pallas_src>
import functools

import jax
import jax.numpy as jnp
from jax.experimental import pallas as pl
from jax.experimental.pallas import tpu as pltpu


def _round_up(x: int, m: int) -> int:
    return (x + m - 1) // m * m


def _policy_kernel(obs_ref, w1_ref, b1_ref, w2_ref, b2_ref, out_ref,
                   *, action_bound: float):
    # fc1: bf16 MXU matmul, f32 accumulation; bias + relu tail in f32 (VPU).
    h = jnp.dot(obs_ref[...], w1_ref[...], preferred_element_type=jnp.float32)
    h = jnp.maximum(h + b1_ref[...], 0.0)
    # fc2: cast activations back to bf16 for the MXU, accumulate in f32,
    # then tanh (EUP) * action_bound in f32.
    a = jnp.dot(h.astype(w2_ref.dtype), w2_ref[...],
                preferred_element_type=jnp.float32) + b2_ref[...]
    out_ref[...] = (jnp.tanh(a) * action_bound).astype(out_ref.dtype)


def prepare_params(w1, b1, w2, b2):
    """One-time (init-time) parameter prep: pad hidden to a lane multiple and cast
    the matmul weights to bf16.  Zero padding is mathematically inert: padded hidden
    columns are relu(0 + 0) = 0 and the matching w2 rows are 0."""
    obs_dim, hidden = w1.shape
    action_dim = w2.shape[1]
    h_pad = _round_up(hidden, 128)
    bf16, f32 = jnp.bfloat16, jnp.float32
    w1_p = jnp.zeros((obs_dim, h_pad), bf16).at[:, :hidden].set(w1.astype(bf16))
    b1_p = jnp.zeros((1, h_pad), f32).at[:, :hidden].set(
        b1.astype(f32).reshape(1, hidden))
    w2_p = jnp.zeros((h_pad, action_dim), bf16).at[:hidden, :].set(w2.astype(bf16))
    b2_p = b2.astype(f32).reshape(1, action_dim)
    return w1_p, b1_p, w2_p, b2_p


@functools.partial(jax.jit, static_argnames=("action_bound",))
def policy_net_forward(obs, w1_p, b1_p, w2_p, b2_p, action_bound: float):
    """obs: (B, obs_dim); padded/bf16 params from prepare_params -> (B, action_dim) f32."""
    B, obs_dim = obs.shape
    h_pad = w1_p.shape[1]
    action_dim = w2_p.shape[1]

    # Matmul inputs in bf16 (a no-op if the caller already stores obs in bf16,
    # which avoids the extra convert round trip on the dominant input stream).
    obs_bf = obs.astype(jnp.bfloat16)

    # Batch tile: multiple of 16 (bf16 sublane packing), cap 1024; >= 2 grid steps
    # for mid/large batches so "parallel" can split across v7x's 2 TensorCores.
    TB = min(1024, _round_up(pl.cdiv(B, 2), 16))
    grid = (pl.cdiv(B, TB),)

    kernel = functools.partial(_policy_kernel, action_bound=float(action_bound))

    return pl.pallas_call(
        kernel,
        out_shape=jax.ShapeDtypeStruct((B, action_dim), jnp.float32),
        grid_spec=pltpu.PrefetchScalarGridSpec(
            num_scalar_prefetch=0,
            grid=grid,
            in_specs=[
                # obs: steps with the grid; full-extent (unpadded) feature dim.
                pl.BlockSpec((TB, obs_dim), lambda i: (i, 0)),
                # Weights/biases: constant index_map -> fetched once, stay resident.
                # TODO(synk): pipeline_mode=pl.Buffered(1) here for v7x prod sizes.
                pl.BlockSpec((obs_dim, h_pad), lambda i: (0, 0)),
                pl.BlockSpec((1, h_pad), lambda i: (0, 0)),
                pl.BlockSpec((h_pad, action_dim), lambda i: (0, 0)),
                pl.BlockSpec((1, action_dim), lambda i: (0, 0)),
            ],
            # Unpadded output (full-extent action_dim): ~16x less HBM write traffic
            # than padding to 128 lanes, and no post-kernel slice / re-read.
            out_specs=pl.BlockSpec((TB, action_dim), lambda i: (i, 0)),
        ),
        compiler_params=pltpu.CompilerParams(
            dimension_semantics=("parallel",),  # v7x: shard batch across both TCs
        ),
    )(obs_bf, w1_p, b1_p, w2_p, b2_p)


def _reference(obs, w1, b1, w2, b2, action_bound):
    h = jnp.maximum(obs @ w1 + b1, 0.0)
    return jnp.tanh(h @ w2 + b2) * action_bound


if __name__ == "__main__":
    # Small shapes consistent with the module.
    batch = 2
    observation_dim = 16
    hidden_dim = 32
    action_dim = 8
    action_bound = 2.0

    key = jax.random.PRNGKey(0)
    k_obs, k_w1, k_b1, k_w2, k_b2 = jax.random.split(key, 5)

    obs = jax.random.normal(k_obs, (batch, observation_dim), dtype=jnp.float32)

    # Deterministic parameter init (synthetic; mimics Linear's uniform fan-in scaling).
    bound1 = 1.0 / (observation_dim ** 0.5)
    bound2 = 1.0 / (hidden_dim ** 0.5)
    w1 = jax.random.uniform(k_w1, (observation_dim, hidden_dim),
                            minval=-bound1, maxval=bound1, dtype=jnp.float32)
    b1 = jax.random.uniform(k_b1, (1, hidden_dim),
                            minval=-bound1, maxval=bound1, dtype=jnp.float32)
    w2 = jax.random.uniform(k_w2, (hidden_dim, action_dim),
                            minval=-bound2, maxval=bound2, dtype=jnp.float32)
    b2 = jax.random.uniform(k_b2, (1, action_dim),
                            minval=-bound2, maxval=bound2, dtype=jnp.float32)

    # One-time parameter prep (hidden padding + bf16 cast) hoisted out of the call path.
    params = prepare_params(w1, b1, w2, b2)

    out = policy_net_forward(obs, *params, action_bound=action_bound)
    out = jax.block_until_ready(out)

    ref = _reference(obs, w1, b1, w2, b2, action_bound)
    assert out.shape == (batch, action_dim)
    # bf16 matmul inputs -> bf16-appropriate tolerance (accumulation & tail are f32).
    assert jnp.allclose(out, ref, atol=5e-2, rtol=5e-2), "mismatch vs. JAX reference"

    print("KERNEL_OK")
</pallas_src>

<mosaic_0001>
module attributes {stable_mosaic.version = 11 : i64} {
  func.func @_policy_kernel(%arg0: i32, %arg1: memref<16x16xbf16, #tpu.memory_space<vmem>>, %arg2: memref<16x128xbf16, #tpu.memory_space<vmem>>, %arg3: memref<1x128xf32, #tpu.memory_space<vmem>>, %arg4: memref<128x8xbf16, #tpu.memory_space<vmem>>, %arg5: memref<1x8xf32, #tpu.memory_space<vmem>>, %arg6: memref<16x8xf32, #tpu.memory_space<vmem>>) attributes {dimension_semantics = [#tpu.dimension_semantics<parallel>], iteration_bounds = array<i64: 1>, scalar_prefetch = 0 : i64, scratch_operands = 0 : i64, tpu.core_type = #tpu.core_type<tc>, window_params = [{transform_indices = @transform_0, window_bounds = array<i64: 16, 16>}, {pipeline_mode = #tpu.pipeline_mode<synchronous>, transform_indices = @transform_1, window_bounds = array<i64: 16, 128>}, {pipeline_mode = #tpu.pipeline_mode<synchronous>, transform_indices = @transform_2, window_bounds = array<i64: 1, 128>}, {pipeline_mode = #tpu.pipeline_mode<synchronous>, transform_indices = @transform_3, window_bounds = array<i64: 128, 8>}, {pipeline_mode = #tpu.pipeline_mode<synchronous>, transform_indices = @transform_4, window_bounds = array<i64: 1, 8>}, {transform_indices = @transform_5, window_bounds = array<i64: 16, 8>}]} {
    %c0 = arith.constant 0 : index
    %c0_0 = arith.constant 0 : index
    %0 = vector.load %arg1[%c0, %c0_0] : memref<16x16xbf16, #tpu.memory_space<vmem>>, vector<16x16xbf16>
    %c0_1 = arith.constant 0 : index
    %c0_2 = arith.constant 0 : index
    %1 = vector.load %arg2[%c0_1, %c0_2] : memref<16x128xbf16, #tpu.memory_space<vmem>>, vector<16x128xbf16>
    %cst = arith.constant dense<0.000000e+00> : vector<16x128xf32>
    %2 = tpu.matmul %0, %1, %cst {dimension_numbers = #tpu.dot_dimension_numbers<[1], [0], [0], [1], [0, 0, 1, 1], [], []>} : vector<16x16xbf16>, vector<16x128xbf16>, vector<16x128xf32> -> vector<16x128xf32>
    %c0_3 = arith.constant 0 : index
    %c0_4 = arith.constant 0 : index
    %3 = vector.load %arg3[%c0_3, %c0_4] : memref<1x128xf32, #tpu.memory_space<vmem>>, vector<1x128xf32>
    %4 = vector.broadcast %3 : vector<1x128xf32> to vector<16x128xf32>
    %5 = arith.addf %2, %4 : vector<16x128xf32>
    %cst_5 = arith.constant 0.000000e+00 : f32
    %6 = vector.broadcast %cst_5 : f32 to vector<16x128xf32>
    %7 = arith.maximumf %5, %6 : vector<16x128xf32>
    %8 = arith.truncf %7 : vector<16x128xf32> to vector<16x128xbf16>
    %c0_6 = arith.constant 0 : index
    %c0_7 = arith.constant 0 : index
    %9 = vector.load %arg4[%c0_6, %c0_7] : memref<128x8xbf16, #tpu.memory_space<vmem>>, vector<128x8xbf16>
    %cst_8 = arith.constant dense<0.000000e+00> : vector<16x8xf32>
    %10 = tpu.matmul %8, %9, %cst_8 {dimension_numbers = #tpu.dot_dimension_numbers<[1], [0], [0], [1], [0, 0, 1, 1], [], []>} : vector<16x128xbf16>, vector<128x8xbf16>, vector<16x8xf32> -> vector<16x8xf32>
    %c0_9 = arith.constant 0 : index
    %c0_10 = arith.constant 0 : index
    %11 = vector.load %arg5[%c0_9, %c0_10] : memref<1x8xf32, #tpu.memory_space<vmem>>, vector<1x8xf32>
    %12 = vector.broadcast %11 : vector<1x8xf32> to vector<16x8xf32>
    %13 = arith.addf %10, %12 : vector<16x8xf32>
    %14 = math.tanh %13 : vector<16x8xf32>
    %cst_11 = arith.constant 2.000000e+00 : f32
    %15 = vector.broadcast %cst_11 : f32 to vector<16x8xf32>
    %16 = arith.mulf %14, %15 : vector<16x8xf32>
    %c0_12 = arith.constant 0 : index
    %c0_13 = arith.constant 0 : index
    %17 = vector.load %arg6[%c0_12, %c0_13] : memref<16x8xf32, #tpu.memory_space<vmem>>, vector<16x8xf32>
    tpu.vector_store %arg6[%c0_12, %c0_13], %16 {strides = array<i32>} : memref<16x8xf32, #tpu.memory_space<vmem>>, vector<16x8xf32>,
    return
  }
  func.func @transform_0(%arg0: i32) -> (i32, i32) {
    %c0_i32 = arith.constant 0 : i32
    %c0_i32_0 = arith.constant 0 : i32
    return %arg0, %c0_i32 : i32, i32
  }
  func.func @transform_1(%arg0: i32) -> (i32, i32) {
    %c0_i32 = arith.constant 0 : i32
    %c0_i32_0 = arith.constant 0 : i32
    %c0_i32_1 = arith.constant 0 : i32
    return %c0_i32, %c0_i32_0 : i32, i32
  }
  func.func @transform_2(%arg0: i32) -> (i32, i32) {
    %c0_i32 = arith.constant 0 : i32
    %c0_i32_0 = arith.constant 0 : i32
    %c0_i32_1 = arith.constant 0 : i32
    return %c0_i32, %c0_i32_0 : i32, i32
  }
  func.func @transform_3(%arg0: i32) -> (i32, i32) {
    %c0_i32 = arith.constant 0 : i32
    %c0_i32_0 = arith.constant 0 : i32
    %c0_i32_1 = arith.constant 0 : i32
    return %c0_i32, %c0_i32_0 : i32, i32
  }
  func.func @transform_4(%arg0: i32) -> (i32, i32) {
    %c0_i32 = arith.constant 0 : i32
    %c0_i32_0 = arith.constant 0 : i32
    %c0_i32_1 = arith.constant 0 : i32
    return %c0_i32, %c0_i32_0 : i32, i32
  }
  func.func @transform_5(%arg0: i32) -> (i32, i32) {
    %c0_i32 = arith.constant 0 : i32
    %c0_i32_0 = arith.constant 0 : i32
    return %arg0, %c0_i32 : i32, i32
  }
}

</mosaic_0001>

<bundles_post_ra>
// kernel: policy_net_forward.1
= control target key start
LH: loop header
LB: loop body
LE: loop exit
PB: predicated region body
PF: predicated region fallthrough
CT: control target
= control target key end

     0   :  { %10 = vsyncpa [#allocation3], 0  ;;  %v54_v1 = vlaneseq  ;;  %v377_v2 = vmov 0.0   ;;  %vm378_vm0 = vmmov 0   ;;  %v379_v13 = vmov 1966171168   ;;  %s482_s0 = inlined_call_operand.vmem [shape: bf16[2,16], index: 0, kind: input, shape index: {}]   ;;  %s483_s1 = inlined_call_operand.vmem [shape: bf16[16,128], index: 1, kind: input, shape index: {}]   ;;  %s484_s2 = inlined_call_operand.vmem [shape: f32[1,128], index: 2, kind: input, shape index: {}]   ;;  %s485_s3 = inlined_call_operand.vmem [shape: bf16[128,8], index: 3, kind: input, shape index: {}]   ;;  %s486_s4 = inlined_call_operand.vmem [shape: f32[1,8], index: 4, kind: input, shape index: {}]   ;;  %s487_s5 = inlined_call_operand.hbm [shape: f32[2,8], index: 5, kind: output, shape index: {}]  }
   0x1   :  { %v340_v0 = vld [vmem:[%s483_s1] sm:$0xff]   ;;  %308 = vmatprep.subr.bf16.mxu0 %v377_v2  ;;  %314 = vmatprep.subr.bf16.mxu1 %v377_v2  ;;  %v52_v14 = vunpack.c.l.s4 %v379_v13  ;;  %v342_v16 = vld [vmem:[%s485_s3 + $0x8] sm:$0xff]   ;;  %v343_v22 = vld [vmem:[%s485_s3 + $0x10] sm:$0xff]   ;;  %vm102_vm1 = vcmask 130048   ;;  %vm266_vm2 = vcmask 64512  }
   0x2   :  { %v22_v3 = vld [vmem:[%s482_s0] sm:$0x1]  ;;  %309 = vmatpush3.bf16.msra.mxu0 %v340_v0  ;;  %310 = vmatprep.mubr.msk.bf16.mxu0 %vm378_vm0, %v377_v2  ;;  %v23_v4 = vld [vmem:[%s482_s0 + $0x1] sm:$0x1]  ;;  %v24_v5 = vld [vmem:[%s482_s0 + $0x2] sm:$0x1] }
   0x3   :  { %v25_v6 = vld [vmem:[%s482_s0 + $0x3] sm:$0x1]  ;;  %v26_v7 = vld [vmem:[%s482_s0 + $0x4] sm:$0x1]  ;;  %v27_v8 = vld [vmem:[%s482_s0 + $0x5] sm:$0x1]  ;;  %330 = vmatprep.mubr.msk.bf16.mxu1 %vm378_vm0, %v377_v2  ;;  %v47_v15 = vcombine.low %v22_v3, %v23_v4  ;;  %v53_v20 = vunpack.c.0.s8 %v52_v14 }
   0x4   :  { %v28_v9 = vld [vmem:[%s482_s0 + $0x6] sm:$0x1]  ;;  %v29_v10 = vld [vmem:[%s482_s0 + $0x7] sm:$0x1]  ;;  %v55_v11 = vshrl.u32 %v54_v1, 7  ;;  %v48_v17 = vcombine.low %v24_v5, %v25_v6  ;;  %v49_v18 = vcombine.low %v26_v7, %v27_v8  ;;  %v344_v29 = vld [vmem:[%s485_s3 + $0x18] sm:$0xff]  }
   0x5   :  { %v341_v12 = vld [vmem:[%s485_s3] sm:$0xff]   ;;  %v50_v19 = vcombine.low %v28_v9, %v29_v10  ;;  %v346_v34 = vld [vmem:[%s485_s3 + $0x28] sm:$0xff]   ;;  %v347_v35 = vld [vmem:[%s485_s3 + $0x30] sm:$0xff]  }
   0x6   :  { %315 = vmatpush3.bf16.msra.mxu1 %v341_v12  ;;  %v56_v21 = vsub.s32 %v53_v20, %v55_v11  ;;  %v345_v33 = vld [vmem:[%s485_s3 + $0x20] sm:$0xff]   ;;  %v348_v36 = vld [vmem:[%s485_s3 + $0x38] sm:$0xff]  }
   0x7   :  { %316 = vmatprep.subr.bf16.mxu1 %v377_v2  ;;  %v285_v37 = vld [vmem:[%s484_s2] ss:$0 sm:$0xff] }
   0x8   :  { %v57_v23 = vrot.slane %v47_v15, %v56_v21  ;;  %v64_v24 = vrot.slane %v48_v17, %v56_v21  ;;  %v71_v25 = vrot.slane %v49_v18, %v56_v21  ;;  %v78_v26 = vrot.slane %v50_v19, %v56_v21  ;;  %v288_v47 = vld [vmem:[%s486_s4] ss:$0 sm:$0xff] }
   0xa   :  { %317 = vmatpush3.bf16.msra.mxu1 %v342_v16  ;;  %v79_v27 = vcombine.low %v57_v23, %v64_v24  ;;  %v80_v28 = vcombine.low %v71_v25, %v78_v26 }
   0xb   :  { %318 = vmatprep.subr.bf16.mxu1 %v377_v2 }
   0xc   :  { %v87_v30 = vrot.slane %v79_v27, %v56_v21  ;;  %v94_v31 = vrot.slane %v80_v28, %v56_v21 }
   0xe   :  { %319 = vmatpush3.bf16.msra.mxu1 %v343_v22  ;;  %v95_v32 = vcombine.low %v87_v30, %v94_v31 }
   0xf   :  { %320 = vmatprep.subr.bf16.mxu1 %v377_v2 }
  0x10   :  { %311 = vmatmul.mubr.msk.bf16.vlgmr.msra.gmra.mrb[0].mxu0 %vm102_vm1, %v95_v32 }
  0x12   :  { %321 = vmatpush3.bf16.msra.mxu1 %v344_v29 }
  0x13   :  { %322 = vmatprep.subr.bf16.mxu1 %v377_v2 }
  0x16   :  { %323 = vmatpush3.bf16.msra.mxu1 %v345_v33 }
  0x17   :  { %324 = vmatprep.subr.bf16.mxu1 %v377_v2 }
  0x1a   :  { %325 = vmatpush3.bf16.msra.mxu1 %v346_v34 }
  0x1b   :  { %326 = vmatprep.subr.bf16.mxu1 %v377_v2 }
  0x1e   :  { %327 = vmatpush3.bf16.msra.mxu1 %v347_v35 }
  0x1f   :  { %328 = vmatprep.subr.bf16.mxu1 %v377_v2 }
  0x22   :  { %329 = vmatpush3.bf16.msra.mxu1 %v348_v36 }
  0xe3   :  { %v140_v38 = vpop.f32.mrb[0].mxu0 }
  0xe4   :  { %v141_v39 = vadd.f32 %v285_v37, %v140_v38  ;;  %v312_v40 = vpop.f32.mrb[1].mxu0 }
  0xe5   :  { %v143_v41 = vpop.f32.mrb[2].mxu0 }
  0xe6   :  { %v144_v42 = vadd.f32 %v285_v37, %v143_v41  ;;  %v313_v43 = vpop.f32.mrb[3].mxu0  ;;  %v147_v44 = vmax.f32 %v141_v39, 0.0 }
  0xe8   :  { %v148_v45 = vmax.f32 %v144_v42, 0.0 }
  0xea   :  { %v149_v46 = vpack.c.bf16 %v148_v45, %v147_v44 }
  0xec   :  { %331 = vmatmul.mubr.bf16.vlgmr.msra.gmra.mrb[0].mxu1 %v149_v46 }
 0x1bf   :  { %v255_v48 = vpop.f32.mrb[0].mxu1 }
 0x1c0   :  { %v256_v49 = vadd.f32 %v288_v47, %v255_v48  ;;  %v332_v50 = vpop.f32.mrb[1].mxu1 }
 0x1c1   :  { %v258_v51 = vpop.f32.mrb[2].mxu1 }
 0x1c2   :  { %349 = vtanh.f32 %v256_v49  ;;  %v259_v52 = vadd.f32 %v288_v47, %v258_v51  ;;  %v333_v53 = vpop.f32.mrb[3].mxu1 }
 0x1c4   :  { %351 = vtanh.f32 %v259_v52 }
 0x1cc   :  { %v350_v54 = vpop.eup %349 }
 0x1cd   :  { %v264_v55 = vmul.f32 2.0, %v350_v54 }
 0x1ce   :  { %v352_v56 = vpop.eup %351 }
 0x1cf   :  { %267 = vst.msk [vmem:[#allocation2] sm:$0xff] %vm266_vm2, %v264_v55  ;;  %v265_v57 = vmul.f32 2.0, %v352_v56 }
 0x1d1   :  { %268 = vst.msk [vmem:[#allocation2 + $0x8] sm:$0xff] %vm266_vm2, %v265_v57 }
 0x1d2   :  { %273 = vsyncadd [#allocation3], 224  ;;  %s380_s2 = smov [#allocation2]  }
 0x1d3   :  { %s274_s3 = sshll.u32 %s380_s2, 4  ;;  %s275_s3 = int_to_ptr.vmem [resolvable:$true] %s274_s3 }
 0x1d4   :  { %s353_s4 = scalar_lea.vmem %s275_s3, 32  ;;  %s357_s28 = scalar_lea.vmem %s275_s3, 256 }
 0x1d5   :  { %p354_p0 = scmp.ne.s32.totalorder %s275_s3, %s353_s4  ;;  %p358_p1 = scmp.lt.s32.totalorder %s275_s3, %s275_s3 }
 0x1d6   :  { %p359_p2 = scmp.lt.s32.totalorder %s357_s28, %s353_s4 }
 0x1d8   :  { %p360_p3 = por %p359_p2, %p358_p1 }
 0x1da   :  { %p361_p4 = pnand %p360_p3, %p354_p0 }
 0x1dc   :  { %364 = shalt.err (!%p361_p4)
}
 0x1dd   :  { %s365_s6 = scalar_lea.hbm %s487_s5, 32 }
 0x1de   :  { %p366_p5 = scmp.ne.s32.totalorder %s487_s5, %s365_s6  ;;  %p369_p6 = scmp.lt.u32.totalorder %s365_s6, %s487_s5 }
 0x1e0   :  { %p371_p7 = pnand %p369_p6, %p366_p5 }
 0x1e2   :  { %374 = shalt.err (!%p371_p7)
}
 0x1e3   :  { %s381_s11 = smov 32   ;;  %s382_s12 = smov 2  }
 0x1e4   :  { %280 = dma.vmem_to_hbm [thread:$0]  %s275_s3, 32, %s487_s5, [#allocation3], %s381_s11, %s381_s11, %s382_s12  }
 0x1e5   :  { %375 = dma.done.wait [#allocation3], 256  }
 0x1e6   :  { %376 = vsyncadd [#allocation3], 4294967040 }
 0x1e7   :  { %284 = vsyncpa [#allocation3], 1 }

</bundles_post_ra>
